<compile_context>
chip_gen: v6e
topology: v6e:2x2x1
jax: 0.10.0
libtpu: 0.0.40
codegen_flags: <defaults>
</compile_context>

<pallas_src>
import jax
import jax.numpy as jnp
from jax.experimental import pallas as pl
from jax.experimental.pallas import tpu as pltpu

ORIENTATION = 8  # group order N of Rot2dOnR2(N=8); channels are multiples of 8


# ---------------------------------------------------------------------------
# Wrapper-side parameter preprocessing (plain JAX, outside the kernels)
# ---------------------------------------------------------------------------
def _band_weight(w, W):
    """(3,3,Cin,Cout) HWIO weights -> (3, W*Cin, W*Cout) block-banded matrices.

    B[dy, xi*Cin+ci, xo*Cout+co] = w[dy, xi-xo+1, ci, co] (0 elsewhere), so an
    H-padded lane-dense image row (W*Cin) @ B[dy] gives the dy-tap contribution
    of the SAME conv for a whole output row, already lane-dense (W*Cout).
    The missing bands implement the zero padding along W for free.
    """
    _, _, Cin, Cout = w.shape
    xi = jnp.arange(W)[:, None]
    xo = jnp.arange(W)[None, :]
    dx = xi - xo + 1
    valid = (dx >= 0) & (dx <= 2)
    taps = w[:, jnp.clip(dx, 0, 2)]                      # (3, W, W, Cin, Cout)
    taps = taps * valid[None, :, :, None, None].astype(w.dtype)
    return jnp.transpose(taps, (0, 1, 3, 2, 4)).reshape(3, W * Cin, W * Cout)


def _upsample_mat(w_in, cin, s, dtype):
    """Exact 0/1 selection matrix for the W-axis nearest upsample by s.

    (h, w_in*Cin) @ S -> (h, (w_in*s)*Cin) with up[.., xo*Cin+c] = lat[.., xo//s, c].
    """
    W = w_in * s
    a = jnp.arange(w_in * cin)[:, None]
    b = jnp.arange(W * cin)[None, :]
    S = ((a % cin == b % cin) & (a // cin == (b // cin) // s)).astype(dtype)
    return S


# ---------------------------------------------------------------------------
# Fused conv kernel
# ---------------------------------------------------------------------------
def _make_kernel(num_in, up_factors, num_mults, has_residual, H, W, Cin, Cout, TH):
    def kernel(*args):
        pos = 0
        in_refs = args[pos:pos + num_in]; pos += num_in          # conv inputs
        b_refs = args[pos:pos + num_in]; pos += num_in           # banded weights
        up_refs = []
        for sf in up_factors:                                    # upsample mats
            if sf > 1:
                up_refs.append(args[pos]); pos += 1
            else:
                up_refs.append(None)
        scale_ref = args[pos]; pos += 1
        bias_ref = args[pos]; pos += 1
        mult_refs = args[pos:pos + num_mults]; pos += num_mults
        resid_ref = args[pos] if has_residual else None
        pos += int(has_residual)
        out_ref = args[pos]; pos += 1
        pad_refs = args[pos:pos + num_in]                        # VMEM scratch

        j = pl.program_id(1)

        # Build the H-zero-padded (H+2, W*Cin) lane-dense image(s) in VMEM once
        # per batch element; nearest upsample is fused here (exact 0/1 matmul
        # along W + sublane broadcast along H) so it never touches HBM.
        @pl.when(j == 0)
        def _build():
            for t in range(num_in):
                pad_refs[t][...] = jnp.zeros_like(pad_refs[t])
                s_up = up_factors[t]
                if s_up == 1:
                    pad_refs[t][1:H + 1, :] = in_refs[t][0].astype(jnp.float32)
                else:
                    rows = jnp.dot(in_refs[t][0], up_refs[t][...],
                                   preferred_element_type=jnp.float32)  # (h, W*Cin)
                    h = H // s_up
                    for yl in range(h):
                        pad_refs[t][1 + yl * s_up:1 + (yl + 1) * s_up, :] = (
                            jnp.broadcast_to(rows[yl:yl + 1, :], (s_up, W * Cin)))

        # 3x3 conv as 3 banded matmuls per input, accumulated across inputs
        # (the accumulation over inputs is the fused channel-concat for conv4).
        row0 = pl.multiple_of(j * TH, TH)
        acc = jnp.zeros((TH, W * Cout), jnp.float32)
        for t in range(num_in):
            for dy in range(3):
                rows = pad_refs[t][pl.ds(row0 + dy, TH), :]       # (TH, W*Cin)
                acc = acc + jnp.dot(rows, b_refs[t][dy],
                                    preferred_element_type=jnp.float32)

        # Folded-BN affine + ReLU, then the fused elementwise epilogue.
        out = jnp.maximum(acc * scale_ref[...] + bias_ref[...], 0.0)
        for m in mult_refs:
            out = out * m[0]
        if resid_ref is not None:
            out = out + resid_ref[0]
        out_ref[0] = out.astype(out_ref.dtype)

    return kernel


def fused_conv3x3_bn_relu(inputs, up_factors, weights, scale, bias,
                          mults=(), residual=None, *, tile_h=8):
    """Fused [nearest-upsample ->] 3x3 SAME conv -> folded-BN -> ReLU
       [-> * mults] [-> + residual], summed over (input, weight) pairs
       (implicit channel concat).

    inputs[t]:  (N, h_t, w_t*Cin) lane-flattened NHWC with h_t*up_factors[t]==H.
    weights[t]: (3, 3, Cin, Cout) HWIO.
    scale/bias: (Cout,) folded inference-BN affine.
    mults / residual: (N, H, W*Cout), applied after the ReLU.
    Returns (N, H, W*Cout).
    """
    num_in = len(inputs)
    N = inputs[0].shape[0]
    Cin, Cout = weights[0].shape[2], weights[0].shape[3]
    H = inputs[0].shape[1] * up_factors[0]
    W = (inputs[0].shape[2] // Cin) * up_factors[0]
    for t in range(num_in):
        assert inputs[t].shape[1] * up_factors[t] == H
        assert (inputs[t].shape[2] // Cin) * up_factors[t] == W
    # Production sizes would pick TH so the blocks are a few MiB; here H=16.
    TH = tile_h if H % tile_h == 0 else H
    nH = H // TH
    dtype = inputs[0].dtype
    num_mults = len(mults)
    has_res = residual is not None

    bands = [_band_weight(w, W) for w in weights]
    scale_row = jnp.tile(scale.astype(jnp.float32), W).reshape(1, W * Cout)
    bias_row = jnp.tile(bias.astype(jnp.float32), W).reshape(1, W * Cout)

    operands, in_specs = [], []
    for x in inputs:                                   # conv inputs (resident)
        operands.append(x)
        in_specs.append(pl.BlockSpec((1,) + x.shape[1:], lambda n, j: (n, 0, 0)))
    for bnd in bands:                                  # banded weights
        operands.append(bnd)
        in_specs.append(pl.BlockSpec(bnd.shape, lambda n, j: (0, 0, 0)))
    for t, sf in enumerate(up_factors):                # upsample selection mats
        if sf > 1:
            S = _upsample_mat(inputs[t].shape[2] // Cin, Cin, sf, dtype)
            operands.append(S)
            in_specs.append(pl.BlockSpec(S.shape, lambda n, j: (0, 0)))
    operands += [scale_row, bias_row]
    in_specs += [pl.BlockSpec((1, W * Cout), lambda n, j: (0, 0))] * 2
    for m in mults:                                    # fused epilogue operands
        operands.append(m)
        in_specs.append(pl.BlockSpec((1, TH, W * Cout), lambda n, j: (n, j, 0)))
    if has_res:
        operands.append(residual)
        in_specs.append(pl.BlockSpec((1, TH, W * Cout), lambda n, j: (n, j, 0)))

    kernel = _make_kernel(num_in, tuple(up_factors), num_mults, has_res,
                          H, W, Cin, Cout, TH)

    flops = 2 * N * H * W * 9 * Cin * Cout * num_in
    bytes_accessed = 4 * (sum(int(op.size) for op in operands) + N * H * W * Cout)

    return pl.pallas_call(
        kernel,
        out_shape=jax.ShapeDtypeStruct((N, H, W * Cout), dtype),
        grid=(N, nH),
        in_specs=in_specs,
        out_specs=pl.BlockSpec((1, TH, W * Cout), lambda n, j: (n, j, 0)),
        scratch_shapes=[pltpu.VMEM((H + 2, W * Cin), jnp.float32)
                        for _ in range(num_in)],
        compiler_params=pltpu.CompilerParams(
            dimension_semantics=("parallel", "arbitrary"),
            vmem_limit_bytes=64 * 1024 * 1024),
        cost_estimate=pl.CostEstimate(flops=flops, transcendentals=0,
                                      bytes_accessed=bytes_accessed),
    )(*operands)


# ---------------------------------------------------------------------------
# Deterministic parameter construction (mirrors __init__ shapes)
# ---------------------------------------------------------------------------
def _make_conv_params(key, cin, cout, eps=1e-5):
    kw, kg, kb, km, kv = jax.random.split(key, 5)
    fan_in = 9 * cin
    w = jax.random.normal(kw, (3, 3, cin, cout), jnp.float32) / jnp.sqrt(fan_in)
    # InnerBatchNorm: one (gamma, beta, mean, var) per regular field, shared
    # across the ORIENTATION channels of that field; folded to scale/bias.
    fields = cout // ORIENTATION
    gamma = 1.0 + 0.1 * jax.random.normal(kg, (fields,), jnp.float32)
    beta = 0.1 * jax.random.normal(kb, (fields,), jnp.float32)
    mean = 0.1 * jax.random.normal(km, (fields,), jnp.float32)
    var = 1.0 + jnp.abs(jax.random.normal(kv, (fields,), jnp.float32))
    scale_f = gamma / jnp.sqrt(var + eps)
    bias_f = beta - mean * scale_f
    return (w, jnp.repeat(scale_f, ORIENTATION), jnp.repeat(bias_f, ORIENTATION))


def make_redcm_u_params(key, inplanes, laterals_len):
    keys = jax.random.split(key, laterals_len + 4)
    return {
        "lat": [_make_conv_params(keys[i], inplanes, inplanes)
                for i in range(laterals_len)],
        "c1": _make_conv_params(keys[laterals_len + 0], inplanes, inplanes),
        "c2": _make_conv_params(keys[laterals_len + 1], inplanes, inplanes),
        "c3": _make_conv_params(keys[laterals_len + 2], inplanes, inplanes),
        "c4": _make_conv_params(keys[laterals_len + 3],
                                inplanes * (laterals_len + 1), inplanes),
    }


# ---------------------------------------------------------------------------
# ReDCM_U forward (Pallas version; NHWC in/out)
# ---------------------------------------------------------------------------
def redcm_u_forward(params, x_nhwc, laterals_nhwc):
    N, H, W, C = x_nhwc.shape
    flat = lambda t: t.reshape(t.shape[0], t.shape[1], t.shape[2] * t.shape[3])

    x = flat(x_nhwc)

    # Lateral branch: fused (nearest upsample -> conv -> BN -> ReLU).
    lats = []
    for i, lat in enumerate(laterals_nhwc):
        w, sc, bi = params["lat"][i]
        lats.append(fused_conv3x3_bn_relu([flat(lat)], [2 ** (i + 1)], [w], sc, bi))

    w, sc, bi = params["c1"]
    y = fused_conv3x3_bn_relu([x], [1], [w], sc, bi, mults=tuple(lats))
    w, sc, bi = params["c2"]
    y = fused_conv3x3_bn_relu([y], [1], [w], sc, bi, residual=x)
    w, sc, bi = params["c3"]
    y = fused_conv3x3_bn_relu([y], [1], [w], sc, bi)

    # conv4 over concat([y] + lats, channel): split the weight along Cin and
    # accumulate inside one kernel -- the concatenated tensor never hits HBM.
    w4, sc4, bi4 = params["c4"]
    w_parts = [w4[:, :, i * C:(i + 1) * C, :] for i in range(len(lats) + 1)]
    y = fused_conv3x3_bn_relu([y] + lats, [1] * (len(lats) + 1), w_parts, sc4, bi4)
    return y.reshape(N, H, W, C)


# ---------------------------------------------------------------------------
# Pure-JAX reference (correctness check)
# ---------------------------------------------------------------------------
def _ref_conv_bn_relu(x, w, scale, bias):
    y = jax.lax.conv_general_dilated(
        x, w, window_strides=(1, 1), padding="SAME",
        dimension_numbers=("NHWC", "HWIO", "NHWC"))
    return jnp.maximum(y * scale + bias, 0.0)


def redcm_u_reference(params, x, laterals):
    lats = []
    for i, lat in enumerate(laterals):
        s = 2 ** (i + 1)
        up = jnp.repeat(jnp.repeat(lat, s, axis=1), s, axis=2)
        lats.append(_ref_conv_bn_relu(up, *params["lat"][i]))
    y = _ref_conv_bn_relu(x, *params["c1"])
    for lat in lats:
        y = y * lat
    y = _ref_conv_bn_relu(y, *params["c2"])
    y = y + x
    y = _ref_conv_bn_relu(y, *params["c3"])
    y = jnp.concatenate([y] + lats, axis=-1)
    y = _ref_conv_bn_relu(y, *params["c4"])
    return y


# ---------------------------------------------------------------------------
if __name__ == "__main__":
    key = jax.random.PRNGKey(0)
    k_params, k_x, k_l0, k_l1 = jax.random.split(key, 4)

    # inplanes must be a multiple of ORIENTATION=8 (regular field type).
    batch, inplanes, H, W = 2, 8, 16, 16
    laterals_len = 2

    params = make_redcm_u_params(k_params, inplanes, laterals_len)

    # PyTorch-NCHW shaped inputs, transposed to NHWC for the kernels.
    x_nchw = jax.random.normal(k_x, (batch, inplanes, H, W), jnp.float32)
    lat0_nchw = jax.random.normal(k_l0, (batch, inplanes, H // 2, W // 2), jnp.float32)
    lat1_nchw = jax.random.normal(k_l1, (batch, inplanes, H // 4, W // 4), jnp.float32)

    to_nhwc = lambda t: jnp.transpose(t, (0, 2, 3, 1))
    x = to_nhwc(x_nchw)
    laterals = [to_nhwc(lat0_nchw), to_nhwc(lat1_nchw)]

    out = jax.block_until_ready(redcm_u_forward(params, x, laterals))
    ref = jax.block_until_ready(redcm_u_reference(params, x, laterals))

    assert out.shape == (batch, H, W, inplanes), out.shape
    max_err = float(jnp.max(jnp.abs(out - ref)))
    assert jnp.allclose(out, ref, rtol=1e-3, atol=1e-3), max_err
    print("KERNEL_OK")
</pallas_src>

<mosaic_0001>
module attributes {stable_mosaic.version = 11 : i64} {
  func.func @kernel(%arg0: i32, %arg1: i32, %arg2: memref<1x8x64xf32, #tpu.memory_space<vmem>>, %arg3: memref<3x128x128xf32, #tpu.memory_space<vmem>>, %arg4: memref<64x128xf32, #tpu.memory_space<vmem>>, %arg5: memref<1x128xf32, #tpu.memory_space<vmem>>, %arg6: memref<1x128xf32, #tpu.memory_space<vmem>>, %arg7: memref<1x8x128xf32, #tpu.memory_space<vmem>>, %arg8: memref<18x128xf32, #tpu.memory_space<vmem>>) attributes {dimension_semantics = [#tpu.dimension_semantics<parallel>, #tpu.dimension_semantics<arbitrary>], iteration_bounds = array<i64: 2, 2>, scalar_prefetch = 0 : i64, scratch_operands = 1 : i64, tpu.core_type = #tpu.core_type<tc>, window_params = [{transform_indices = @transform_0, window_bounds = array<i64: 1, 8, 64>}, {pipeline_mode = #tpu.pipeline_mode<synchronous>, transform_indices = @transform_1, window_bounds = array<i64: 3, 128, 128>}, {pipeline_mode = #tpu.pipeline_mode<synchronous>, transform_indices = @transform_2, window_bounds = array<i64: 64, 128>}, {pipeline_mode = #tpu.pipeline_mode<synchronous>, transform_indices = @transform_3, window_bounds = array<i64: 1, 128>}, {pipeline_mode = #tpu.pipeline_mode<synchronous>, transform_indices = @transform_4, window_bounds = array<i64: 1, 128>}, {transform_indices = @transform_5, window_bounds = array<i64: 1, 8, 128>}]} {
    %c0_i32 = arith.constant 0 : i32
    %0 = arith.cmpi eq, %arg1, %c0_i32 : i32
    %1 = arith.extui %0 : i1 to i32
    %c0_i32_0 = arith.constant 0 : i32
    %2 = arith.cmpi ne, %1, %c0_i32_0 : i32
    scf.if %2 {
      %cst_22 = arith.constant 0.000000e+00 : f32
      %38 = vector.broadcast %cst_22 : f32 to vector<18x128xf32>
      %c0_23 = arith.constant 0 : index
      %c0_24 = arith.constant 0 : index
      %39 = vector.load %arg8[%c0_23, %c0_24] : memref<18x128xf32, #tpu.memory_space<vmem>>, vector<18x128xf32>
      tpu.vector_store %arg8[%c0_23, %c0_24], %38 {strides = array<i32>} : memref<18x128xf32, #tpu.memory_space<vmem>>, vector<18x128xf32>,
      %c0_25 = arith.constant 0 : index
      %c0_26 = arith.constant 0 : index
      %c0_27 = arith.constant 0 : index
      %40 = vector.load %arg2[%c0_25, %c0_26, %c0_27] : memref<1x8x64xf32, #tpu.memory_space<vmem>>, vector<1x8x64xf32>
      %41 = vector.shape_cast %40 : vector<1x8x64xf32> to vector<8x64xf32>
      %c0_28 = arith.constant 0 : index
      %c0_29 = arith.constant 0 : index
      %42 = vector.load %arg4[%c0_28, %c0_29] : memref<64x128xf32, #tpu.memory_space<vmem>>, vector<64x128xf32>
      %cst_30 = arith.constant dense<0.000000e+00> : vector<8x128xf32>
      %43 = tpu.matmul %41, %42, %cst_30 {dimension_numbers = #tpu.dot_dimension_numbers<[1], [0], [0], [1], [0, 0, 1, 1], [], []>} : vector<8x64xf32>, vector<64x128xf32>, vector<8x128xf32> -> vector<8x128xf32>
      %44 = vector.extract_strided_slice %43 {offsets = [0, 0], sizes = [1, 128], strides = [1, 1]} : vector<8x128xf32> to vector<1x128xf32>
      %45 = vector.shape_cast %44 : vector<1x128xf32> to vector<1x128xf32>
      %46 = vector.broadcast %45 : vector<1x128xf32> to vector<2x128xf32>
      %c1_31 = arith.constant 1 : index
      %c0_32 = arith.constant 0 : index
      %47 = vector.load %arg8[%c1_31, %c0_32] : memref<18x128xf32, #tpu.memory_space<vmem>>, vector<2x128xf32>
      tpu.vector_store %arg8[%c1_31, %c0_32], %46 {strides = array<i32>} : memref<18x128xf32, #tpu.memory_space<vmem>>, vector<2x128xf32>,
      %48 = vector.extract_strided_slice %43 {offsets = [1, 0], sizes = [1, 128], strides = [1, 1]} : vector<8x128xf32> to vector<1x128xf32>
      %49 = vector.shape_cast %48 : vector<1x128xf32> to vector<1x128xf32>
      %50 = vector.broadcast %49 : vector<1x128xf32> to vector<2x128xf32>
      %c3 = arith.constant 3 : index
      %c0_33 = arith.constant 0 : index
      %51 = vector.load %arg8[%c3, %c0_33] : memref<18x128xf32, #tpu.memory_space<vmem>>, vector<2x128xf32>
      tpu.vector_store %arg8[%c3, %c0_33], %50 {strides = array<i32>} : memref<18x128xf32, #tpu.memory_space<vmem>>, vector<2x128xf32>,
      %52 = vector.extract_strided_slice %43 {offsets = [2, 0], sizes = [1, 128], strides = [1, 1]} : vector<8x128xf32> to vector<1x128xf32>
      %53 = vector.shape_cast %52 : vector<1x128xf32> to vector<1x128xf32>
      %54 = vector.broadcast %53 : vector<1x128xf32> to vector<2x128xf32>
      %c5 = arith.constant 5 : index
      %c0_34 = arith.constant 0 : index
      %55 = vector.load %arg8[%c5, %c0_34] : memref<18x128xf32, #tpu.memory_space<vmem>>, vector<2x128xf32>
      tpu.vector_store %arg8[%c5, %c0_34], %54 {strides = array<i32>} : memref<18x128xf32, #tpu.memory_space<vmem>>, vector<2x128xf32>,
      %56 = vector.extract_strided_slice %43 {offsets = [3, 0], sizes = [1, 128], strides = [1, 1]} : vector<8x128xf32> to vector<1x128xf32>
      %57 = vector.shape_cast %56 : vector<1x128xf32> to vector<1x128xf32>
      %58 = vector.broadcast %57 : vector<1x128xf32> to vector<2x128xf32>
      %c7 = arith.constant 7 : index
      %c0_35 = arith.constant 0 : index
      %59 = vector.load %arg8[%c7, %c0_35] : memref<18x128xf32, #tpu.memory_space<vmem>>, vector<2x128xf32>
      tpu.vector_store %arg8[%c7, %c0_35], %58 {strides = array<i32>} : memref<18x128xf32, #tpu.memory_space<vmem>>, vector<2x128xf32>,
      %60 = vector.extract_strided_slice %43 {offsets = [4, 0], sizes = [1, 128], strides = [1, 1]} : vector<8x128xf32> to vector<1x128xf32>
      %61 = vector.shape_cast %60 : vector<1x128xf32> to vector<1x128xf32>
      %62 = vector.broadcast %61 : vector<1x128xf32> to vector<2x128xf32>
      %c9 = arith.constant 9 : index
      %c0_36 = arith.constant 0 : index
      %63 = vector.load %arg8[%c9, %c0_36] : memref<18x128xf32, #tpu.memory_space<vmem>>, vector<2x128xf32>
      tpu.vector_store %arg8[%c9, %c0_36], %62 {strides = array<i32>} : memref<18x128xf32, #tpu.memory_space<vmem>>, vector<2x128xf32>,
      %64 = vector.extract_strided_slice %43 {offsets = [5, 0], sizes = [1, 128], strides = [1, 1]} : vector<8x128xf32> to vector<1x128xf32>
      %65 = vector.shape_cast %64 : vector<1x128xf32> to vector<1x128xf32>
      %66 = vector.broadcast %65 : vector<1x128xf32> to vector<2x128xf32>
      %c11 = arith.constant 11 : index
      %c0_37 = arith.constant 0 : index
      %67 = vector.load %arg8[%c11, %c0_37] : memref<18x128xf32, #tpu.memory_space<vmem>>, vector<2x128xf32>
      tpu.vector_store %arg8[%c11, %c0_37], %66 {strides = array<i32>} : memref<18x128xf32, #tpu.memory_space<vmem>>, vector<2x128xf32>,
      %68 = vector.extract_strided_slice %43 {offsets = [6, 0], sizes = [1, 128], strides = [1, 1]} : vector<8x128xf32> to vector<1x128xf32>
      %69 = vector.shape_cast %68 : vector<1x128xf32> to vector<1x128xf32>
      %70 = vector.broadcast %69 : vector<1x128xf32> to vector<2x128xf32>
      %c13 = arith.constant 13 : index
      %c0_38 = arith.constant 0 : index
      %71 = vector.load %arg8[%c13, %c0_38] : memref<18x128xf32, #tpu.memory_space<vmem>>, vector<2x128xf32>
      tpu.vector_store %arg8[%c13, %c0_38], %70 {strides = array<i32>} : memref<18x128xf32, #tpu.memory_space<vmem>>, vector<2x128xf32>,
      %72 = vector.extract_strided_slice %43 {offsets = [7, 0], sizes = [1, 128], strides = [1, 1]} : vector<8x128xf32> to vector<1x128xf32>
      %73 = vector.shape_cast %72 : vector<1x128xf32> to vector<1x128xf32>
      %74 = vector.broadcast %73 : vector<1x128xf32> to vector<2x128xf32>
      %c15 = arith.constant 15 : index
      %c0_39 = arith.constant 0 : index
      %75 = vector.load %arg8[%c15, %c0_39] : memref<18x128xf32, #tpu.memory_space<vmem>>, vector<2x128xf32>
      tpu.vector_store %arg8[%c15, %c0_39], %74 {strides = array<i32>} : memref<18x128xf32, #tpu.memory_space<vmem>>, vector<2x128xf32>,
    } else {
    }
    %c8_i32 = arith.constant 8 : i32
    %3 = arith.muli %arg1, %c8_i32 : i32
    %4 = tpu.assume_multiple %3, 8 : i32
    %cst = arith.constant 0.000000e+00 : f32
    %5 = vector.broadcast %cst : f32 to vector<8x128xf32>
    %c0_i32_1 = arith.constant 0 : i32
    %6 = arith.addi %4, %c0_i32_1 : i32
    %7 = arith.index_cast %6 : i32 to index
    %c0 = arith.constant 0 : index
    %8 = vector.load %arg8[%7, %c0] : memref<18x128xf32, #tpu.memory_space<vmem>>, vector<8x128xf32>
    %c0_2 = arith.constant 0 : index
    %c0_3 = arith.constant 0 : index
    %c0_4 = arith.constant 0 : index
    %9 = vector.load %arg3[%c0_2, %c0_3, %c0_4] : memref<3x128x128xf32, #tpu.memory_space<vmem>>, vector<1x128x128xf32>
    %10 = vector.shape_cast %9 : vector<1x128x128xf32> to vector<128x128xf32>
    %cst_5 = arith.constant dense<0.000000e+00> : vector<8x128xf32>
    %11 = tpu.matmul %8, %10, %cst_5 {dimension_numbers = #tpu.dot_dimension_numbers<[1], [0], [0], [1], [0, 0, 1, 1], [], []>} : vector<8x128xf32>, vector<128x128xf32>, vector<8x128xf32> -> vector<8x128xf32>
    %12 = arith.addf %5, %11 : vector<8x128xf32>
    %c1_i32 = arith.constant 1 : i32
    %13 = arith.addi %4, %c1_i32 : i32
    %14 = arith.index_cast %13 : i32 to index
    %c0_6 = arith.constant 0 : index
    %15 = vector.load %arg8[%14, %c0_6] : memref<18x128xf32, #tpu.memory_space<vmem>>, vector<8x128xf32>
    %c1 = arith.constant 1 : index
    %c0_7 = arith.constant 0 : index
    %c0_8 = arith.constant 0 : index
    %16 = vector.load %arg3[%c1, %c0_7, %c0_8] : memref<3x128x128xf32, #tpu.memory_space<vmem>>, vector<1x128x128xf32>
    %17 = vector.shape_cast %16 : vector<1x128x128xf32> to vector<128x128xf32>
    %cst_9 = arith.constant dense<0.000000e+00> : vector<8x128xf32>
    %18 = tpu.matmul %15, %17, %cst_9 {dimension_numbers = #tpu.dot_dimension_numbers<[1], [0], [0], [1], [0, 0, 1, 1], [], []>} : vector<8x128xf32>, vector<128x128xf32>, vector<8x128xf32> -> vector<8x128xf32>
    %19 = arith.addf %12, %18 : vector<8x128xf32>
    %c2_i32 = arith.constant 2 : i32
    %20 = arith.addi %4, %c2_i32 : i32
    %21 = arith.index_cast %20 : i32 to index
    %c0_10 = arith.constant 0 : index
    %22 = vector.load %arg8[%21, %c0_10] : memref<18x128xf32, #tpu.memory_space<vmem>>, vector<8x128xf32>
    %c2 = arith.constant 2 : index
    %c0_11 = arith.constant 0 : index
    %c0_12 = arith.constant 0 : index
    %23 = vector.load %arg3[%c2, %c0_11, %c0_12] : memref<3x128x128xf32, #tpu.memory_space<vmem>>, vector<1x128x128xf32>
    %24 = vector.shape_cast %23 : vector<1x128x128xf32> to vector<128x128xf32>
    %cst_13 = arith.constant dense<0.000000e+00> : vector<8x128xf32>
    %25 = tpu.matmul %22, %24, %cst_13 {dimension_numbers = #tpu.dot_dimension_numbers<[1], [0], [0], [1], [0, 0, 1, 1], [], []>} : vector<8x128xf32>, vector<128x128xf32>, vector<8x128xf32> -> vector<8x128xf32>
    %26 = arith.addf %19, %25 : vector<8x128xf32>
    %c0_14 = arith.constant 0 : index
    %c0_15 = arith.constant 0 : index
    %27 = vector.load %arg5[%c0_14, %c0_15] : memref<1x128xf32, #tpu.memory_space<vmem>>, vector<1x128xf32>
    %28 = vector.broadcast %27 : vector<1x128xf32> to vector<8x128xf32>
    %29 = arith.mulf %26, %28 : vector<8x128xf32>
    %c0_16 = arith.constant 0 : index
    %c0_17 = arith.constant 0 : index
    %30 = vector.load %arg6[%c0_16, %c0_17] : memref<1x128xf32, #tpu.memory_space<vmem>>, vector<1x128xf32>
    %31 = vector.broadcast %30 : vector<1x128xf32> to vector<8x128xf32>
    %32 = arith.addf %29, %31 : vector<8x128xf32>
    %cst_18 = arith.constant 0.000000e+00 : f32
    %33 = vector.broadcast %cst_18 : f32 to vector<8x128xf32>
    %34 = arith.maximumf %32, %33 : vector<8x128xf32>
    %c0_19 = arith.constant 0 : index
    %c0_20 = arith.constant 0 : index
    %c0_21 = arith.constant 0 : index
    %35 = vector.load %arg7[%c0_19, %c0_20, %c0_21] : memref<1x8x128xf32, #tpu.memory_space<vmem>>, vector<1x8x128xf32>
    %36 = vector.shape_cast %35 : vector<1x8x128xf32> to vector<8x128xf32>
    %37 = vector.shape_cast %34 : vector<8x128xf32> to vector<1x8x128xf32>
    tpu.vector_store %arg7[%c0_19, %c0_20, %c0_21], %37 {strides = array<i32>} : memref<1x8x128xf32, #tpu.memory_space<vmem>>, vector<1x8x128xf32>,
    return
  }
  func.func @transform_0(%arg0: i32, %arg1: i32) -> (i32, i32, i32) {
    %c0_i32 = arith.constant 0 : i32
    %c0_i32_0 = arith.constant 0 : i32
    %c0_i32_1 = arith.constant 0 : i32
    return %arg0, %c0_i32, %c0_i32_0 : i32, i32, i32
  }
  func.func @transform_1(%arg0: i32, %arg1: i32) -> (i32, i32, i32) {
    %c0_i32 = arith.constant 0 : i32
    %c0_i32_0 = arith.constant 0 : i32
    %c0_i32_1 = arith.constant 0 : i32
    %c0_i32_2 = arith.constant 0 : i32
    return %c0_i32, %c0_i32_0, %c0_i32_1 : i32, i32, i32
  }
  func.func @transform_2(%arg0: i32, %arg1: i32) -> (i32, i32) {
    %c0_i32 = arith.constant 0 : i32
    %c0_i32_0 = arith.constant 0 : i32
    %c0_i32_1 = arith.constant 0 : i32
    return %c0_i32, %c0_i32_0 : i32, i32
  }
  func.func @transform_3(%arg0: i32, %arg1: i32) -> (i32, i32) {
    %c0_i32 = arith.constant 0 : i32
    %c0_i32_0 = arith.constant 0 : i32
    %c0_i32_1 = arith.constant 0 : i32
    return %c0_i32, %c0_i32_0 : i32, i32
  }
  func.func @transform_4(%arg0: i32, %arg1: i32) -> (i32, i32) {
    %c0_i32 = arith.constant 0 : i32
    %c0_i32_0 = arith.constant 0 : i32
    %c0_i32_1 = arith.constant 0 : i32
    return %c0_i32, %c0_i32_0 : i32, i32
  }
  func.func @transform_5(%arg0: i32, %arg1: i32) -> (i32, i32, i32) {
    %c0_i32 = arith.constant 0 : i32
    %c0_i32_0 = arith.constant 0 : i32
    return %arg0, %arg1, %c0_i32 : i32, i32, i32
  }
}

</mosaic_0001>

<bundles_post_ra>
// kernel: tpu_custom_call.1
= control target key start
LH: loop header
LB: loop body
LE: loop exit
PB: predicated region body
PF: predicated region fallthrough
CT: control target
= control target key end

     0   :  { %s1713_s0 = inlined_call_operand.hbm [shape: f32[2,8,64], index: 0, kind: input, shape index: {}]   ;;  %s1714_s1 = inlined_call_operand.hbm [shape: f32[3,128,128], index: 1, kind: input, shape index: {}]   ;;  %s1715_s2 = inlined_call_operand.hbm [shape: f32[64,128], index: 2, kind: input, shape index: {}]   ;;  %s1716_s3 = inlined_call_operand.vmem [shape: f32[1,128], index: 3, kind: input, shape index: {}]   ;;  %s1717_s4 = inlined_call_operand.vmem [shape: f32[1,128], index: 4, kind: input, shape index: {}]   ;;  %s1718_s5 = inlined_call_operand.hbm [shape: f32[2,16,128], index: 5, kind: output, shape index: {}]  }
   0x1   :  { %1729 = sst [smem:[#allocation18_spill]] %s1714_s1 }
   0x2   :  { %1730 = sst [smem:[#allocation19_spill]] %s1715_s2 }
   0x3   :  { %1731 = sst [smem:[#allocation20_spill]] %s1717_s4 }
   0x4   :  { %1732 = sst [smem:[#allocation21_spill]] %s1718_s5 }
   0x5   :  { %10 = vsyncpa [#allocation4], 0 }
   0x6   :  { %12 = vsyncpa [#allocation4 + $0x1], 0 }
   0x7   :  { %13 = vsyncpa [#allocation7], 0 }
   0x8   :  { %14 = vsyncpa [#allocation5], 0 }
   0x9   :  { %16 = vsyncpa [#allocation5 + $0x1], 0  ;;  %s1413_s18 = smov 0   ;;  %s1415_s19 = smov 0  }
   0xa   :  { %s1417_s20 = smov 0   ;;  %s1419_s21 = smov 0  }
   0xb   :  { %s1421_s22 = smov 0   ;;  %s1423_s23 = smov 0  }
   0xc   :  { %s1425_s24 = smov 0   ;;  %s1427_s25 = smov 0  }
   0xd   :  { %s1429_s26 = smov 0   ;;  %s1431_s27 = smov 0  }
   0xe   :  { %s1433_s28 = smov 0  }
   0xf LB: > { %1733 = sst [smem:[#allocation13_spill]] %s1331_s18  ;;  %s827_s29 = sadd.s32 4294967295, %s1371_s28   ;;  %s1371_s28 = sphi %s1433_s28, %s22_s28   ;;  %s1367_s27 = sphi %s1431_s27, %s1765_s27   ;;  %s1363_s26 = sphi %s1429_s26, %s1757_s26   ;;  %s1359_s25 = sphi %s1427_s25, %s1764_s25   ;;  %s1355_s24 = sphi %s1425_s24, %s1756_s24   ;;  %s1351_s23 = sphi %s1423_s23, %s1763_s23   ;;  %s1347_s22 = sphi %s1421_s22, %s1762_s22   ;;  %s1343_s21 = sphi %s1419_s21, %s1761_s21   ;;  %s1339_s20 = sphi %s1417_s20, %s1760_s20   ;;  %s1335_s19 = sphi %s1415_s19, %s1759_s19   ;;  %s1331_s18 = sphi %s1413_s18, %s1758_s18  }
  0x10   : > { %1734 = sst [smem:[#allocation14_spill]] %s1363_s26  ;;  %s828_s30 = sadd.s32 4294967294, %s1371_s28  }
  0x11   : > { %p54_p0 = scmp.ne.s32.totalorder %s1347_s22, %s1343_s21  ;;  %p1469_p1 = scmp.eq.s32.totalorder %s827_s29, 0 }
  0x12   : > { %p163_p2 = scmp.ne.s32.totalorder %s1339_s20, %s1335_s19  ;;  %p164_p3 = scmp.eq.s32.totalorder %s827_s29, 3 }
  0x13   : > { %s1735_s6 = scalar_select %p1469_p1, 1, 0 }
  0x14   : > { %p1477_p4 = por %p1469_p1, %p54_p0  ;;  %p169_p5 = scmp.ne.s32.totalorder %s1335_s19, %s1331_s18 }
  0x15   : > { %p1483_p6 = por %p164_p3, %p163_p2  ;;  %p170_p7 = scmp.eq.s32.totalorder %s828_s30, 3 }
  0x16   : > { %p829_p8 = scmp.ge.s32.totalorder %s1371_s28, 1  ;;  %p177_p9 = scmp.lt.s32.totalorder %s1371_s28, 5 }
  0x17   : > { %s1737_s8 = scalar_select %p1483_p6, 1, 0 }
  0x18   : > { %p1489_p10 = por %p170_p7, %p169_p5  ;;  %p1493_p11 = pnand %p829_p8, %p177_p9 }
  0x19   : > { %1738 = sst [smem:[#allocation15_spill]] %s1737_s8  ;;  %s1373_s11 = smov [#allocation6]  }
  0x1a   : > { %s1739_s9 = scalar_select %p1489_p10, 1, 0 }
  0x1b   : > { %s189_s12 = sshll.u32 %s1373_s11, 4  ;;  %p1050_p12 = pneg %p1493_p11  ;;  %s190_s12 = int_to_ptr.vmem [resolvable:$true] %s189_s12 }
  0x1c   : > { %1740 = sst [smem:[#allocation16_spill]] %s1739_s9  ;;  %s1374_s14 = smov [#allocation8]  }
  0x1d   : > { %p1501_p13 = pnand %p1050_p12, %p1469_p1  ;;  %s202_s15 = sshll.u32 %s1374_s14, 4  ;;  %s203_s15 = int_to_ptr.vmem [resolvable:$true] %s202_s15 }
  0x1e   : > { %s1178_s16 = scalar_lea.vmem %s190_s12, 6144  ;;  %p1186_p7 = scmp.lt.s32.totalorder %s190_s12, %s190_s12 }
  0x1f   : > { %p1169_p0 = pneg %p1501_p13  ;;  %p1179_p2 = scmp.ne.s32.totalorder %s190_s12, %s1178_s16 }
  0x20   : > { %p1187_p8 = scmp.lt.s32.totalorder %s1178_s16, %s1178_s16 }
  0x21   : > { %p1181_p3 = pnand %p1179_p2, %p1169_p0 }
  0x22   : > { %p1188_p9 = por %p1187_p8, %p1186_p7 }
  0x23   : > { %p1182_p5 = pneg %p1181_p3 }
  0x25   : > { %p1189_p12 = pnand %p1188_p9, %p1182_p5 }
  0x27   : > { %1192 = shalt.err (!%p1189_p12)
}
  0x28   : > { %s1375_s17 = smov 128   ;;  %s1376_s21 = smov 8  }
  0x29   : > { %s1743_s1 = sld [smem:[#allocation18_spill]]  ;;  %s1204_s11 = scalar_lea.vmem %s203_s15, 1024 }
  0x2a   : > { %p1205_p10 = scmp.ne.s32.totalorder %s203_s15, %s1204_s11  ;;  %p1212_p6 = scmp.lt.s32.totalorder %s203_s15, %s203_s15 }
  0x2b   : > { %p1213_p1 = scmp.lt.s32.totalorder %s1204_s11, %s1204_s11 }
  0x2c   : > { %p1207_p2 = pnand %p1205_p10, %p1169_p0 }
  0x2d   : > { %p1214_p7 = por %p1213_p1, %p1212_p6 }
  0x2e   : > { %p1208_p3 = pneg %p1207_p2 }
  0x2f   : > { %1053 = dma.hbm_to_vmem [thread:$0]  (!%p1501_p13), %s1743_s1, 6144, %s190_s12, [#allocation7], %s1375_s17, %s1375_s17, %s1376_s21  }
  0x30   : > { %p1215_p5 = pnand %p1214_p7, %p1208_p3 }
  0x32   : > { %1218 = shalt.err (!%p1215_p5)
}
  0x33   : > { %s1744_s2 = sld [smem:[#allocation19_spill]]  ;;  %s31_s12 = sadd.s32 1, %s1363_s26 }
  0x34   : > { %p32_p1 = scmp.ge.s32.totalorder %s31_s12, 2  ;;  %s34_s13 = sadd.s32 1, %s1367_s27 }
  0x35   : > { %s41_s29 = sadd.s32 1, %s1351_s23  ;;  %p48_p6 = scmp.ne.s32.totalorder %s1351_s23, %s1347_s22 }
  0x36   : > { %s1767_s12 = smov (%p32_p1, %s31_s12), 0  ;;  %s1769_s13 = smov (!%p32_p1, %s34_s13), %s1367_s27 }
  0x37   : > { %1745 = sst [smem:[#allocation17_spill]] %s1767_s12  ;;  %p49_p10 = scmp.eq.s32.totalorder %s1371_s28, 0 }
  0x38   : > { %s149_s30 = ssub.s32 %s1363_s26, %s1767_s12  ;;  %p36_p0 = scmp.ge.s32.totalorder %s1769_s13, 2 }
  0x39   : > { %1056 = dma.hbm_to_vmem [thread:$0]  (!%p1501_p13), %s1744_s2, 1024, %s203_s15, [#allocation7], %s1375_s17, %s1375_s17, %s1376_s21  }
  0x3a   : > { %s153_s11 = sadd.s32 1, %s1339_s20  ;;  %p1535_p8 = por %p49_p10, %p48_p6 }
  0x3b   : > { %p1067_p13 = scmp.lt.s32.totalorder %s1371_s28, 4  ;;  %s1771_s13 = smov (%p36_p0, %s1769_s13), 0 }
  0x3c   : > { %s222_s17 = sand.u32 1, %s1351_s23   ;;  %s834_s21 = sshll.u32 %s1367_s27, 7 }
  0x3d   : > { %s38_s14 = ssub.s32 %s1367_s27, %s1771_s13  ;;  %s833_s1 = sshll.u32 %s222_s17, 3 }
  0x3e   : > { %p39_p9 = scmp.eq.s32.totalorder %s38_s14, 0  ;;  %s150_s16 = sor.u32 %s149_s30, %s38_s14 }
  0x3f   : > { %p151_p12 = scmp.eq.s32.totalorder %s150_s16, 0  ;;  %s231_s18 = scalar_lea.hbm %s1713_s0, %s834_s21 }
  0x40   : > { %s1547_s2 = scalar_select %p39_p9, %s1351_s23, %s41_s29  }
  0x41   : > { %s1550_s12 = scalar_select %p151_p12, %s1339_s20, %s153_s11  }
  0x42   : > { %s226_s5 = scalar_lea.vmem [#allocation3], %s833_s1  ;;  %p1559_p2 = pnand %p1067_p13, %p1535_p8 }
  0x43   : > { %s233_s4 = sshll.u32 %s226_s5, 4  ;;  %s223_s30 = scalar_lea.sflag [#allocation4], %s222_s17  ;;  %s234_s4 = int_to_ptr.vmem [resolvable:$true] %s233_s4 }
  0x44   : > { %p1221_p3 = pneg %p1559_p2  ;;  %s1232_s29 = scalar_lea.vmem %s234_s4, 128 }
  0x45   : > { %p1233_p7 = scmp.ne.s32.totalorder %s234_s4, %s1232_s29  ;;  %s1377_s11 = smov [#allocation3]  }
  0x46   : > { %s1237_s26 = sshll.u32 %s1377_s11, 4  ;;  %s1238_s26 = int_to_ptr.vmem [resolvable:$false] %s1237_s26 }
  0x47   : > { %p1235_p5 = pnand %p1233_p7, %p1221_p3  ;;  %s1239_s1 = scalar_lea.vmem %s1238_s26, 256 }
  0x48   : > { %p1240_p6 = scmp.lt.s32.totalorder %s234_s4, %s1238_s26  ;;  %p1241_p10 = scmp.lt.s32.totalorder %s1239_s1, %s1232_s29 }
  0x49   : > { %p1236_p1 = pneg %p1235_p5 }
  0x4a   : > { %p1242_p0 = por %p1241_p10, %p1240_p6 }
  0x4c   : > { %p1243_p8 = pnand %p1242_p0, %p1236_p1 }
  0x4e   : > { %1246 = shalt.err (!%p1243_p8)
}
  0x4f   : > { %1060 = dma.hbm_to_vmem [thread:$0]  (!%p1559_p2), %s231_s18, 128, %s234_s4, %s223_s30  }
  0x50   : > { %242 = sbr.rel (%p1493_p11) target bundleno = 592 (0x250), region = 40  ;;  %s244_s5 = sand.u32 (!%p1493_p11), 1, %s1347_s22  }
  0x51   : > { %s1570_s9 = sshll.u32 (!%p1493_p11), %s244_s5, 3  ;;  %s245_s15 = scalar_lea.sflag (!%p1493_p11), [#allocation4], %s244_s5 }
  0x52   : > { %s248_s17 = scalar_lea.vmem (!%p1493_p11), [#allocation3], %s1570_s9 }
  0x55   : > { %1318 = dma.done.wait (%p1477_p4), %s245_s15, 128  }
  0x56   : > { %1320 = vsyncadd (%p1477_p4), %s245_s15, 4294967168  ;;  %p1748_p13 = scmp.ne.s32.totalorder %s1735_s6, 0 }
  0x58   : > { %1322 = dma.done.wait (%p1748_p13), [#allocation7], 7168  }
  0x59   : > { %1324 = vsyncadd (%p1748_p13), [#allocation7], 4294960128  ;;  %s280_s4 = sand.u32 1, %s1335_s19   ;;  %p840_p11 = scmp.ne.s32.totalorder %s1355_s24, 0 }
  0x5a   : > { %s1584_s18 = sshll.u32 %s280_s4, 3 }
  0x5b   : > { %s282_s8 = scalar_lea.vmem [#allocation9], %s1584_s18  ;;  %286 = sbr.rel (%p840_p11) target bundleno = 312 (0x138), region = 56 }
  0x60   : > { %v298_v0 = vld [vmem:[#allocation8 + $0x38] sm:$0xff]  ;;  %v1378_v1 = vmov 0.0   ;;  %v297_v2 = vld [vmem:[#allocation8 + $0x30] sm:$0xff]  ;;  %vm1379_vm0 = vmmov 0   ;;  %v296_v3 = vld [vmem:[#allocation8 + $0x28] sm:$0xff]  ;;  %vm299_vm1 = vcmask 523264   ;;  %v373_v10 = vlaneseq }
  0x61   : > { %914 = vmatprep.subr.mxu0 %v1378_v1  ;;  %287 = vst [vmem:[#allocation2] sm:$0xff] %v1378_v1  ;;  %288 = vst [vmem:[#allocation2 + $0x8] sm:$0xff] %v1378_v1  ;;  %930 = vmatprep.mubr.msk.f32.mxu0 %vm1379_vm0, %v1378_v1  ;;  %v295_v4 = vld [vmem:[#allocation8 + $0x20] sm:$0xff]  ;;  %v294_v5 = vld [vmem:[#allocation8 + $0x18] sm:$0xff] }
  0x62   : > { %289 = vst [vmem:[#allocation2 + $0x10] sm:$0x3] %v1378_v1  ;;  %915 = vmatpush3.msra.mxu0 %v298_v0  ;;  %v293_v6 = vld [vmem:[#allocation8 + $0x10] sm:$0xff]  ;;  %v292_v7 = vld [vmem:[#allocation8 + $0x8] sm:$0xff]  ;;  %v291_v8 = vld [vmem:[#allocation8] sm:$0xff]  ;;  %v374_v11 = vshrl.u32 %v373_v10, 7 }
  0x63   : > { %916 = vmatprep.subr.mxu0 %v1378_v1  ;;  %v290_v9 = vld [vmem:[%s248_s17] sm:$0xff] }
  0x64   : > { %917 = vmatpush3.msra.mxu0 %v297_v2  ;;  %v375_v12 = vsub.s32 0, %v374_v11  ;;  %v380_v13 = vsub.s32 1, %v374_v11  ;;  %v385_v14 = vsub.s32 2, %v374_v11  ;;  %v390_v15 = vsub.s32 3, %v374_v11 }
  0x65   : > { %918 = vmatprep.subr.mxu0 %v1378_v1  ;;  %v395_v16 = vsub.s32 4, %v374_v11  ;;  %v400_v17 = vsub.s32 5, %v374_v11  ;;  %v405_v18 = vsub.s32 6, %v374_v11  ;;  %v410_v19 = vsub.s32 7, %v374_v11 }
  0x66   : > { %919 = vmatpush3.msra.mxu0 %v296_v3 }
  0x67   : > { %920 = vmatprep.subr.mxu0 %v1378_v1 }
  0x68   : > { %921 = vmatpush3.msra.mxu0 %v295_v4 }
  0x69   : > { %922 = vmatprep.subr.mxu0 %v1378_v1 }
  0x6a   : > { %923 = vmatpush3.msra.mxu0 %v294_v5 }
  0x6b   : > { %924 = vmatprep.subr.mxu0 %v1378_v1 }
  0x6c   : > { %925 = vmatpush3.msra.mxu0 %v293_v6 }
  0x6d   : > { %926 = vmatprep.subr.mxu0 %v1378_v1 }
  0x6e   : > { %927 = vmatpush3.msra.mxu0 %v292_v7 }
  0x6f   : > { %928 = vmatprep.subr.mxu0 %v1378_v1 }
  0x70   : > { %929 = vmatpush3.msra.mxu0 %v291_v8 }
  0x71   : > { %931 = vmatmul.mubr.msk.f32.vlgmr.msra.gmra.mxu0 %vm299_vm1, %v290_v9 }
 0x131   : > { %v369_v20 = vpop.f32.mrf.mxu0 }
 0x132   : > { %v376_v21 = vrot.slane %v369_v20, %v375_v12  ;;  %v381_v22 = vrot.slane %v369_v20, %v380_v13  ;;  %v386_v23 = vrot.slane %v369_v20, %v385_v14  ;;  %v391_v24 = vrot.slane %v369_v20, %v390_v15 }
 0x133   : > { %v396_v25 = vrot.slane %v369_v20, %v395_v16  ;;  %v401_v26 = vrot.slane %v369_v20, %v400_v17  ;;  %v406_v27 = vrot.slane %v369_v20, %v405_v18  ;;  %v411_v28 = vrot.slane %v369_v20, %v410_v19  ;;  %v932_v29 = vpop.f32.mrf.mxu0 }
 0x134   : > { %377 = vst [vmem:[#allocation2 + $0x1] sm:$0x3] %v376_v21  ;;  %382 = vst [vmem:[#allocation2 + $0x3] sm:$0x3] %v381_v22 }
 0x135   : > { %387 = vst [vmem:[#allocation2 + $0x5] sm:$0x3] %v386_v23  ;;  %392 = vst [vmem:[#allocation2 + $0x7] sm:$0x3] %v391_v24 }
 0x136   : > { %397 = vst [vmem:[#allocation2 + $0x9] sm:$0x3] %v396_v25  ;;  %402 = vst [vmem:[#allocation2 + $0xb] sm:$0x3] %v401_v26 }
 0x137   : > { %407 = vst [vmem:[#allocation2 + $0xd] sm:$0x3] %v406_v27  ;;  %412 = vst [vmem:[#allocation2 + $0xf] sm:$0x3] %v411_v28 }
 0x138 PF: > { %v451_v30 = vld [vmem:[#allocation6 + $0xf8] sm:$0xff]  ;;  %v1380_v32 = vmov 0.0   ;;  %v450_v33 = vld [vmem:[#allocation6 + $0xf0] sm:$0xff]  ;;  %v449_v35 = vld [vmem:[#allocation6 + $0xe8] sm:$0xff]  ;;  %s842_s6 = sshll.u32 %s1355_s24, 3  ;;  %vm1381_vm2 = vmmov 0  }
 0x139   : > { %v431_v31 = vld [vmem:[#allocation6 + $0x78] sm:$0xff]  ;;  %933 = vmatprep.subr.mxu0 %v1380_v32  ;;  %968 = vmatprep.subr.mxu1 %v1380_v32  ;;  %v430_v34 = vld [vmem:[#allocation6 + $0x70] sm:$0xff]  ;;  %v429_v36 = vld [vmem:[#allocation6 + $0x68] sm:$0xff]  ;;  %s1621_s7 = scalar_lea.vmem [#allocation2], %s842_s6  ;;  %s850_s10 = sshll.u32 %s1359_s25, 1 }
 0x13a   : > { %934 = vmatpush3.msra.mxu0 %v451_v30  ;;  %969 = vmatpush3.msra.mxu1 %v431_v31  ;;  %v448_v37 = vld [vmem:[#allocation6 + $0xe0] sm:$0xff]  ;;  %v447_v39 = vld [vmem:[#allocation6 + $0xd8] sm:$0xff]  ;;  %v446_v41 = vld [vmem:[#allocation6 + $0xd0] sm:$0xff]  ;;  %s1749_s16 = sld [smem:[#allocation15_spill]]  ;;  %s713_s30 = sadd.s32 %s1355_s24, %s850_s10 }
 0x13b   : > { %935 = vmatprep.subr.mxu0 %v1380_v32  ;;  %970 = vmatprep.subr.mxu1 %v1380_v32  ;;  %v428_v38 = vld [vmem:[#allocation6 + $0x60] sm:$0xff]  ;;  %v427_v40 = vld [vmem:[#allocation6 + $0x58] sm:$0xff]  ;;  %v426_v42 = vld [vmem:[#allocation6 + $0x50] sm:$0xff]  ;;  %s1750_s26 = sld [smem:[#allocation20_spill]]  ;;  %s851_s1 = sshll.u32 %s713_s30, 7 }
 0x13c   : > { %936 = vmatpush3.msra.mxu0 %v450_v33  ;;  %971 = vmatpush3.msra.mxu1 %v430_v34  ;;  %v445_v43 = vld [vmem:[#allocation6 + $0xc8] sm:$0xff]  ;;  %v444_v45 = vld [vmem:[#allocation6 + $0xc0] sm:$0xff]  ;;  %v443_v47 = vld [vmem:[#allocation6 + $0xb8] sm:$0xff]  ;;  %s717_s5 = sshll.u32 %s282_s8, 4  ;;  %s1751_s15 = sld [smem:[#allocation21_spill]]  ;;  %s718_s5 = int_to_ptr.vmem [resolvable:$true] %s717_s5 }
 0x13d   : > { %937 = vmatprep.subr.mxu0 %v1380_v32  ;;  %972 = vmatprep.subr.mxu1 %v1380_v32  ;;  %v425_v44 = vld [vmem:[#allocation6 + $0x48] sm:$0xff]  ;;  %v424_v46 = vld [vmem:[#allocation6 + $0x40] sm:$0xff]  ;;  %v423_v48 = vld [vmem:[#allocation6 + $0x38] sm:$0xff]  ;;  %s702_s24 = scalar_lea.sflag [#allocation5], %s280_s4  ;;  %s1247_s6 = scalar_lea.vmem %s718_s5, 128 }
 0x13e   : > { %938 = vmatpush3.msra.mxu0 %v449_v35  ;;  %973 = vmatpush3.msra.mxu1 %v429_v36  ;;  %v442_v49 = vld [vmem:[#allocation6 + $0xb0] sm:$0xff]  ;;  %v441_v51 = vld [vmem:[#allocation6 + $0xa8] sm:$0xff]  ;;  %v440_v53 = vld [vmem:[#allocation6 + $0xa0] sm:$0xff]  ;;  %p1248_p4 = scmp.ne.s32.totalorder %s718_s5, %s1247_s6 }
 0x13f   : > { %939 = vmatprep.subr.mxu0 %v1380_v32  ;;  %974 = vmatprep.subr.mxu1 %v1380_v32  ;;  %v422_v50 = vld [vmem:[#allocation6 + $0x30] sm:$0xff]  ;;  %v421_v52 = vld [vmem:[#allocation6 + $0x28] sm:$0xff]  ;;  %v420_v54 = vld [vmem:[#allocation6 + $0x20] sm:$0xff] }
 0x140   : > { %940 = vmatpush3.msra.mxu0 %v448_v37  ;;  %975 = vmatpush3.msra.mxu1 %v428_v38  ;;  %v439_v55 = vld [vmem:[#allocation6 + $0x98] sm:$0xff]  ;;  %v438_v57 = vld [vmem:[#allocation6 + $0x90] sm:$0xff]  ;;  %v437_v59 = vld [vmem:[#allocation6 + $0x88] sm:$0xff]  ;;  %p1752_p9 = scmp.ne.s32.totalorder %s1749_s16, 0 }
 0x141   : > { %941 = vmatprep.subr.mxu0 %v1380_v32  ;;  %976 = vmatprep.subr.mxu1 %v1380_v32  ;;  %v419_v56 = vld [vmem:[#allocation6 + $0x18] sm:$0xff]  ;;  %v418_v58 = vld [vmem:[#allocation6 + $0x10] sm:$0xff]  ;;  %v417_v60 = vld [vmem:[#allocation6 + $0x8] sm:$0xff] }
 0x142   : > { %942 = vmatpush3.msra.mxu0 %v447_v39  ;;  %977 = vmatpush3.msra.mxu1 %v427_v40  ;;  %v436_v61 = vld [vmem:[#allocation6 + $0x80] sm:$0xff]  ;;  %v415_v0 = vld [vmem:[%s1621_s7] sm:$0xff]  ;;  %v610_v2 = vld [vmem:[#allocation6 + $0x170] sm:$0xff]  ;;  %s715_s17 = scalar_lea.hbm %s1751_s15, %s851_s1  ;;  %p1249_p12 = pnand %p1248_p4, %p1752_p9 }
 0x143   : > { %943 = vmatprep.subr.mxu0 %v1380_v32  ;;  %978 = vmatprep.subr.mxu1 %v1380_v32  ;;  %v844_v62 = vld [vmem:[%s1621_s7 + $0x1] sm:$0xff]  ;;  %v609_v3 = vld [vmem:[#allocation6 + $0x168] sm:$0xff]  ;;  %v606_v6 = vld [vmem:[#allocation6 + $0x150] sm:$0xff] }
 0x144   : > { %944 = vmatpush3.msra.mxu0 %v446_v41  ;;  %979 = vmatpush3.msra.mxu1 %v426_v42  ;;  %v416_v63 = vld [vmem:[#allocation6] sm:$0xff]  ;;  %v611_v1 = vld [vmem:[#allocation6 + $0x178] sm:$0xff]  ;;  %v605_v7 = vld [vmem:[#allocation6 + $0x148] sm:$0xff]  ;;  %p1250_p2 = pneg %p1249_p12 }
 0x145   : > { %945 = vmatprep.subr.mxu0 %v1380_v32  ;;  %980 = vmatprep.subr.mxu1 %v1380_v32  ;;  %v608_v4 = vld [vmem:[#allocation6 + $0x160] sm:$0xff]  ;;  %v607_v5 = vld [vmem:[#allocation6 + $0x158] sm:$0xff]  ;;  %v602_v10 = vld [vmem:[#allocation6 + $0x130] sm:$0xff] }
 0x146   : > { %946 = vmatpush3.msra.mxu0 %v445_v43  ;;  %981 = vmatpush3.msra.mxu1 %v425_v44  ;;  %v604_v8 = vld [vmem:[#allocation6 + $0x140] sm:$0xff]  ;;  %v603_v9 = vld [vmem:[#allocation6 + $0x138] sm:$0xff]  ;;  %v601_v11 = vld [vmem:[#allocation6 + $0x128] sm:$0xff] }
 0x147   : > { %947 = vmatprep.subr.mxu0 %v1380_v32  ;;  %982 = vmatprep.subr.mxu1 %v1380_v32  ;;  %v600_v12 = vld [vmem:[#allocation6 + $0x120] sm:$0xff]  ;;  %v599_v13 = vld [vmem:[#allocation6 + $0x118] sm:$0xff]  ;;  %v598_v14 = vld [vmem:[#allocation6 + $0x110] sm:$0xff] }
 0x148   : > { %948 = vmatpush3.msra.mxu0 %v444_v45  ;;  %983 = vmatpush3.msra.mxu1 %v424_v46  ;;  %v597_v15 = vld [vmem:[#allocation6 + $0x108] sm:$0xff]  ;;  %v596_v16 = vld [vmem:[#allocation6 + $0x100] sm:$0xff]  ;;  %v847_v24 = vld [vmem:[%s1716_s3] ss:$0 sm:$0xff] }
 0x149   : > { %949 = vmatprep.subr.mxu0 %v1380_v32  ;;  %984 = vmatprep.subr.mxu1 %v1380_v32  ;;  %v846_v17 = vld [vmem:[%s1621_s7 + $0x2] sm:$0xff]  ;;  %v848_v27 = vld [vmem:[%s1750_s26] ss:$0 sm:$0xff]  ;;  %s1382_s7 = smov [#allocation9]  }
 0x14a   : > { %950 = vmatpush3.msra.mxu0 %v443_v47  ;;  %985 = vmatpush3.msra.mxu1 %v423_v48  ;;  %s1251_s10 = sshll.u32 %s1382_s7, 4  ;;  %s1252_s10 = int_to_ptr.vmem [resolvable:$false] %s1251_s10 }
 0x14b   : > { %951 = vmatprep.subr.mxu0 %v1380_v32  ;;  %986 = vmatprep.subr.mxu1 %v1380_v32  ;;  %s1253_s21 = scalar_lea.vmem %s1252_s10, 256  ;;  %p1254_p3 = scmp.lt.s32.totalorder %s718_s5, %s1252_s10 }
 0x14c   : > { %952 = vmatpush3.msra.mxu0 %v442_v49  ;;  %987 = vmatpush3.msra.mxu1 %v422_v50  ;;  %p1255_p7 = scmp.lt.s32.totalorder %s1253_s21, %s1247_s6 }
 0x14d   : > { %953 = vmatprep.subr.mxu0 %v1380_v32  ;;  %988 = vmatprep.subr.mxu1 %v1380_v32 }
 0x14e   : > { %954 = vmatpush3.msra.mxu0 %v441_v51  ;;  %989 = vmatpush3.msra.mxu1 %v421_v52  ;;  %p1256_p5 = por %p1255_p7, %p1254_p3 }
 0x14f   : > { %955 = vmatprep.subr.mxu0 %v1380_v32  ;;  %990 = vmatprep.subr.mxu1 %v1380_v32 }
 0x150   : > { %956 = vmatpush3.msra.mxu0 %v440_v53  ;;  %991 = vmatpush3.msra.mxu1 %v420_v54  ;;  %p1257_p1 = pnand %p1256_p5, %p1250_p2 }
 0x151   : > { %957 = vmatprep.subr.mxu0 %v1380_v32  ;;  %992 = vmatprep.subr.mxu1 %v1380_v32 }
 0x152   : > { %958 = vmatpush3.msra.mxu0 %v439_v55  ;;  %993 = vmatpush3.msra.mxu1 %v419_v56 }
 0x153   : > { %959 = vmatprep.subr.mxu0 %v1380_v32  ;;  %994 = vmatprep.subr.mxu1 %v1380_v32 }
 0x154   : > { %960 = vmatpush3.msra.mxu0 %v438_v57  ;;  %995 = vmatpush3.msra.mxu1 %v418_v58 }
 0x155   : > { %961 = vmatprep.subr.mxu0 %v1380_v32  ;;  %996 = vmatprep.subr.mxu1 %v1380_v32 }
 0x156   : > { %962 = vmatpush3.msra.mxu0 %v437_v59  ;;  %997 = vmatpush3.msra.mxu1 %v417_v60 }
 0x157   : > { %963 = vmatprep.subr.mxu0 %v1380_v32  ;;  %965 = vmatprep.mubr.msk.f32.mxu0 %vm1381_vm2, %v1380_v32 }
 0x158   : > { %964 = vmatpush3.msra.mxu0 %v436_v61  ;;  %998 = vmatprep.subr.mxu1 %v1380_v32 }
 0x159   : > { %966 = vmatmul.mubr.f32.vlgmr.msra.gmra.mxu0 %v844_v62  ;;  %999 = vmatpush3.msra.mxu1 %v416_v63 }
 0x15a   : > { %1000 = vmatprep.mubr.msk.f32.mxu1 %vm1381_vm2, %v1380_v32  ;;  %1003 = vmatprep.subr.mxu0 %v1380_v32 }
 0x15b   : > { %1001 = vmatmul.mubr.f32.vlgmr.msra.gmra.mxu1 %v415_v0  ;;  %1004 = vmatpush3.msra.mxu0 %v611_v1 }
 0x15c   : > { %1005 = vmatprep.subr.mxu0 %v1380_v32  ;;  %1035 = vmatprep.mubr.msk.f32.mxu0 %vm1381_vm2, %v1380_v32 }
 0x15d   : > { %1006 = vmatpush3.msra.mxu0 %v610_v2 }
 0x15e   : > { %1007 = vmatprep.subr.mxu0 %v1380_v32 }
 0x15f   : > { %1008 = vmatpush3.msra.mxu0 %v609_v3 }
 0x160   : > { %1009 = vmatprep.subr.mxu0 %v1380_v32 }
 0x161   : > { %1010 = vmatpush3.msra.mxu0 %v608_v4 }
 0x162   : > { %1011 = vmatprep.subr.mxu0 %v1380_v32 }
 0x163   : > { %1012 = vmatpush3.msra.mxu0 %v607_v5 }
 0x164   : > { %1013 = vmatprep.subr.mxu0 %v1380_v32 }
 0x165   : > { %1014 = vmatpush3.msra.mxu0 %v606_v6 }
 0x166   : > { %1015 = vmatprep.subr.mxu0 %v1380_v32 }
 0x167   : > { %1016 = vmatpush3.msra.mxu0 %v605_v7 }
 0x168   : > { %1017 = vmatprep.subr.mxu0 %v1380_v32 }
 0x169   : > { %1018 = vmatpush3.msra.mxu0 %v604_v8 }
 0x16a   : > { %1019 = vmatprep.subr.mxu0 %v1380_v32 }
 0x16b   : > { %1020 = vmatpush3.msra.mxu0 %v603_v9 }
 0x16c   : > { %1021 = vmatprep.subr.mxu0 %v1380_v32 }
 0x16d   : > { %1022 = vmatpush3.msra.mxu0 %v602_v10 }
 0x16e   : > { %1023 = vmatprep.subr.mxu0 %v1380_v32 }
 0x16f   : > { %1024 = vmatpush3.msra.mxu0 %v601_v11 }
 0x170   : > { %1025 = vmatprep.subr.mxu0 %v1380_v32 }
 0x171   : > { %1026 = vmatpush3.msra.mxu0 %v600_v12 }
 0x172   : > { %1027 = vmatprep.subr.mxu0 %v1380_v32 }
 0x173   : > { %1028 = vmatpush3.msra.mxu0 %v599_v13 }
 0x174   : > { %1029 = vmatprep.subr.mxu0 %v1380_v32 }
 0x175   : > { %1030 = vmatpush3.msra.mxu0 %v598_v14 }
 0x176   : > { %1031 = vmatprep.subr.mxu0 %v1380_v32 }
 0x177   : > { %1032 = vmatpush3.msra.mxu0 %v597_v15 }
 0x178   : > { %1033 = vmatprep.subr.mxu0 %v1380_v32 }
 0x179   : > { %1034 = vmatpush3.msra.mxu0 %v596_v16 }
 0x17a   : > { %1036 = vmatmul.mubr.f32.vlgmr.msra.gmra.mxu0 %v846_v17 }
 0x219   : > { %v518_v18 = vpop.f32.mrf.mxu0 }
 0x21b   : > { %v588_v19 = vpop.f32.mrf.mxu1  ;;  %v967_v20 = vpop.f32.mrf.mxu0 }
 0x21c   : > { %v589_v22 = vadd.f32 %v588_v19, %v518_v18 }
 0x21d   : > { %v1002_v21 = vpop.f32.mrf.mxu1 }
 0x23a   : > { %v678_v23 = vpop.f32.mrf.mxu0 }
 0x23b   : > { %v682_v25 = vadd.f32 %v678_v23, %v589_v22 }
 0x23c   : > { %v1037_v26 = vpop.f32.mrf.mxu0 }
 0x23d   : > { %v690_v28 = vmul.f32 %v847_v24, %v682_v25 }
 0x23f   : > { %v698_v29 = vadd.f32 %v848_v27, %v690_v28 }
 0x241   : > { %v699_v30 = vmax.f32 %v698_v29, 0.0 }
 0x243   : > { %700 = vst [vmem:[%s282_s8] sm:$0xff] %v699_v30 }
 0x244   : > { %1260 = shalt.err (!%p1257_p1)
}
 0x245   : > { %s1261_s14 = scalar_lea.hbm %s715_s17, 128  ;;  %s1265_s8 = scalar_lea.hbm %s1751_s15, 512 }
 0x246   : > { %p1262_p6 = scmp.ne.s32.totalorder %s715_s17, %s1261_s14  ;;  %p1266_p8 = scmp.lt.s32.totalorder %s715_s17, %s1751_s15 }
 0x247   : > { %p1267_p13 = scmp.lt.s32.totalorder %s1265_s8, %s1261_s14 }
 0x248   : > { %p1263_p10 = pnand %p1262_p6, %p1752_p9 }
 0x249   : > { %p1268_p11 = por %p1267_p13, %p1266_p8 }
 0x24a   : > { %p1264_p0 = pneg %p1263_p10 }
 0x24c   : > { %p1269_p4 = pnand %p1268_p11, %p1264_p0 }
 0x24e   : > { %1272 = shalt.err (!%p1269_p4)
}
 0x24f   : > { %1048 = dma.vmem_to_hbm [thread:$0]  (%p1752_p9), %s718_s5, 128, %s715_s17, %s702_s24  }
 0x250 PF: > { %s1753_s11 = sld [smem:[#allocation13_spill]]  ;;  %p1070_p12 = scmp.ge.s32.totalorder %s1371_s28, 2 }
 0x251   : > { %s1754_s26 = sld [smem:[#allocation16_spill]] }
 0x256   : > { %s729_s1 = sand.u32 1, %s1753_s11  }
 0x257   : > { %p1755_p2 = scmp.ne.s32.totalorder %s1754_s26, 0  ;;  %s730_s25 = scalar_lea.sflag [#allocation5], %s729_s1 }
 0x259   : > { %p1062_p3 = pnand %p1070_p12, %p1755_p2 }
 0x25b   : > { %p1063_p7 = pneg %p1062_p3 }
 0x25d   : > { %1326 = dma.done.wait (%p1063_p7), %s730_s25, 128  }
 0x25e   : > { %1328 = vsyncadd (%p1063_p7), %s730_s25, 4294967168  ;;  %s22_s28 = sadd.s32 1, %s1371_s28   ;;  %s1756_s24 = sld [smem:[#allocation14_spill]] }
 0x25f   : > { %p19_p5 = scmp.ge.s32.totalorder %s22_s28, 6   ;;  %s1757_s26 = sld [smem:[#allocation17_spill]] }
 0x260   : > { %s1758_s18 = smov %s1335_s19  ;;  %s1759_s19 = smov %s1339_s20 }
 0x261   : > { %s1760_s20 = smov %s1550_s12  ;;  %s1761_s21 = smov %s1347_s22 }
 0x262   : > { %s1762_s22 = smov %s1351_s23  ;;  %s1763_s23 = smov %s1547_s2 }
 0x263   : > { %s1764_s25 = smov %s1367_s27  ;;  %s1765_s27 = smov %s1771_s13 }
 0x264   :  { %21 = sbr.rel (!%p19_p5) target bundleno = 15 (0xf), region = 102 }
 0x269   :  { %735 = vsyncpa [#allocation4], 1 }
 0x26a   :  { %737 = vsyncpa [#allocation4 + $0x1], 1 }
 0x26b   :  { %738 = vsyncpa [#allocation7], 1 }
 0x26c   :  { %739 = vsyncpa [#allocation5], 1 }
 0x26d   :  { %741 = vsyncpa [#allocation5 + $0x1], 1 }

</bundles_post_ra>
